<compile_context>
chip_gen: v7x
topology: tpu7x:2x2x1
jax: 0.10.0
libtpu: 0.0.40
codegen_flags: <defaults>
</compile_context>

<pallas_src>
import numpy as np
import jax
import jax.numpy as jnp
from jax.experimental import pallas as pl
from jax.experimental.pallas import tpu as pltpu

GROUP_COL = 6          # column of clust_label holding the aggregation target
LANES = 128            # lane width
N_PAR = 2              # parallel grid axis (v7x dual TensorCore); no-op on 1-TC chips
MAX_TILE_ROWS = 1024   # 1024 x 128 = 131072 edges / tile (~1.1 MiB f32 logits + 128 KiB i8)
ROW_ALIGN = 32         # int8 native sublane tile -> tile rows must be a multiple of 32


def _edge_channel_kernel(logits_ref, code_ref, out_ref):
    """Per-tile edge loss with resident per-core partial sums.

    logits_ref : (T, 256) f32   [:, :128] = class-0 logit, [:, 128:] = class-1 logit
    code_ref   : (T, 128) i8    0 = invalid/padding, 1 = valid & label 0, 2 = valid & label 1
    out_ref    : (1, 2, 8, 128) f32 resident output block (accumulator):
                 [0, 0] = sum(ce * valid), [0, 1] = sum(correct * valid)
    """
    @pl.when(pl.program_id(1) == 0)
    def _init():
        out_ref[...] = jnp.zeros_like(out_ref)

    lg = logits_ref[...]
    l0 = lg[:, :LANES]
    l1 = lg[:, LANES:]

    code = code_ref[...].astype(jnp.int32)
    valid = code > 0
    label1 = code > 1
    validf = valid.astype(jnp.float32)

    # 2-class cross entropy == softplus(wrong_logit - target_logit), stable form.
    # (log1p written as log(1+x) to stay on guaranteed-lowered EUP ops.)
    d = jnp.where(label1, l0 - l1, l1 - l0)
    ce = jnp.maximum(d, 0.0) + jnp.log(1.0 + jnp.exp(-jnp.abs(d)))

    # argmax over 2 classes; ties -> class 0 (torch first-index argmax convention)
    correct = ((l1 > l0) == label1).astype(jnp.float32)

    # Fold (T, 128) contributions into (8, 128) planes: the reshape splits the
    # sublane axis on a tile boundary (no relayout) and the sum over the new
    # leading axis is plain VPU vreg adds — no per-tile XLU/SMEM reduction.
    t = lg.shape[0]
    g = t // 8
    loss_plane = (ce * validf).reshape(g, 8, LANES).sum(axis=0)
    corr_plane = (correct * validf).reshape(g, 8, LANES).sum(axis=0)

    out_ref[0, 0] += loss_plane
    out_ref[0, 1] += corr_plane


def _round_up(x, m):
    return ((x + m - 1) // m) * m


def edge_channel_loss(clust_label, clusts, edge_index, edge_pred,
                      target_col=GROUP_COL):
    """Replicates EdgeChannelLoss.forward for mode='group', loss='ce',
    balance_loss=False, high_purity=False."""
    # ---- ragged glue (host) ---------------------------------------------------
    # TODO(synk): spine's get_cluster_label does a majority vote over each
    # cluster's voxels; labels are consistent per cluster here so the
    # first-voxel lookup is equivalent.  Moving this ragged extraction and the
    # packing below upstream (device-side, amortized) would remove per-call
    # host work for large graphs.
    group_ids = np.array(
        [int(clust_label[c[0], target_col]) for c in clusts], dtype=np.int64)
    edge_index = np.asarray(edge_index, dtype=np.int64)
    g_src = group_ids[edge_index[0]]
    g_dst = group_ids[edge_index[1]]

    valid = (g_src > -1) & (g_dst > -1)          # both endpoints have a group
    label1 = g_src == g_dst                      # mode='group' edge assignment
    count = int(valid.sum())                     # known on host, not accumulated on TPU

    edge_pred_np = np.asarray(edge_pred, dtype=np.float32)
    n_edges = edge_pred_np.shape[0]

    # ---- lane-dense packing ----------------------------------------------------
    rows_needed = max(1, -(-n_edges // LANES))
    tile_rows = min(MAX_TILE_ROWS,
                    _round_up(-(-rows_needed // N_PAR), ROW_ALIGN))
    total_rows = _round_up(rows_needed, N_PAR * tile_rows)
    n_inner = total_rows // (N_PAR * tile_rows)
    e_pad = total_rows * LANES

    logits = np.zeros((e_pad, 2), dtype=np.float32)
    logits[:n_edges] = edge_pred_np
    l0 = logits[:, 0].reshape(total_rows, LANES)
    l1 = logits[:, 1].reshape(total_rows, LANES)
    logits_slab = np.concatenate([l0, l1], axis=1)            # (total_rows, 256) f32

    code = np.zeros((e_pad,), dtype=np.int8)                  # 0 = invalid / padding
    code[:n_edges] = np.where(valid, np.where(label1, 2, 1), 0).astype(np.int8)
    code = code.reshape(total_rows, LANES)                    # (total_rows, 128) i8

    # ---- Pallas call ------------------------------------------------------------
    logits_spec = pl.BlockSpec((tile_rows, 2 * LANES),
                               lambda c, i: (c * n_inner + i, 0))
    code_spec = pl.BlockSpec((tile_rows, LANES),
                             lambda c, i: (c * n_inner + i, 0))
    out_spec = pl.BlockSpec((1, 2, 8, LANES), lambda c, i: (c, 0, 0, 0))

    partials = pl.pallas_call(
        _edge_channel_kernel,
        out_shape=jax.ShapeDtypeStruct((N_PAR, 2, 8, LANES), jnp.float32),
        grid=(N_PAR, n_inner),
        in_specs=[logits_spec, code_spec],
        out_specs=out_spec,
        compiler_params=pltpu.CompilerParams(
            dimension_semantics=("parallel", "arbitrary")),
    )(jnp.asarray(logits_slab), jnp.asarray(code))

    loss_sum = jnp.sum(partials[:, 0])
    corr_sum = jnp.sum(partials[:, 1])

    if count > 0:
        loss = loss_sum / count
        acc = corr_sum / count
    else:
        loss = loss_sum                  # sum over an empty set == 0
        acc = jnp.float32(1.0)           # accuracy defaults to 1.0
    return {'accuracy': acc, 'loss': loss, 'count': count}


if __name__ == "__main__":
    # ---- deterministic synthetic inputs (small shapes) -------------------------
    rng = np.random.default_rng(0)
    key = jax.random.PRNGKey(0)

    n_voxels = 64
    n_feat = 10          # clust_label: (N, 1 + D + N_f), GROUP_COL = 6
    n_clusts = 10
    n_edges = 24

    # group of each cluster (-1 marks clusters excluded from the loss)
    group_of_clust = np.array([0, 0, 1, 1, 2, -1, 2, 3, 3, -1], dtype=np.int32)
    clust_of_voxel = rng.integers(0, n_clusts, size=n_voxels)
    clust_of_voxel[:n_clusts] = np.arange(n_clusts)   # every cluster non-empty

    clust_label = np.zeros((n_voxels, n_feat), dtype=np.float32)
    clust_label[:, GROUP_COL] = group_of_clust[clust_of_voxel]

    clusts = [np.where(clust_of_voxel == c)[0] for c in range(n_clusts)]
    edge_index = rng.integers(0, n_clusts, size=(2, n_edges)).astype(np.int32)
    edge_pred = jax.random.normal(key, (n_edges, 2), dtype=jnp.float32)

    out = edge_channel_loss(clust_label, clusts, edge_index, edge_pred)
    out = {k: jax.block_until_ready(v) for k, v in out.items()}

    # ---- pure NumPy reference check --------------------------------------------
    gids = np.array([clust_label[c[0], GROUP_COL] for c in clusts], dtype=np.int64)
    gs_r, gd_r = gids[edge_index[0]], gids[edge_index[1]]
    valid = (gs_r > -1) & (gd_r > -1)
    lab = (gs_r == gd_r).astype(np.int64)
    ep = np.asarray(edge_pred, dtype=np.float64)
    m = ep.max(axis=1)
    lse = m + np.log(np.exp(ep[:, 0] - m) + np.exp(ep[:, 1] - m))
    ce = lse - ep[np.arange(n_edges), lab]
    count_r = int(valid.sum())
    ref_loss = ce[valid].sum() / max(count_r, 1)
    ref_acc = float(((ep[:, 1] > ep[:, 0]).astype(np.int64) == lab)[valid].sum()) \
        / max(count_r, 1)

    assert int(out['count']) == count_r, (int(out['count']), count_r)
    assert abs(float(out['loss']) - ref_loss) < 1e-4, (float(out['loss']), ref_loss)
    assert abs(float(out['accuracy']) - ref_acc) < 1e-5, (float(out['accuracy']), ref_acc)

    print("KERNEL_OK")
</pallas_src>

<mosaic_0001>
module attributes {stable_mosaic.version = 11 : i64} {
  func.func @_edge_channel_kernel(%arg0: i32, %arg1: i32, %arg2: memref<32x256xf32, #tpu.memory_space<vmem>>, %arg3: memref<32x128xi8, #tpu.memory_space<vmem>>, %arg4: memref<1x2x8x128xf32, #tpu.memory_space<vmem>>) attributes {dimension_semantics = [#tpu.dimension_semantics<parallel>, #tpu.dimension_semantics<arbitrary>], iteration_bounds = array<i64: 2, 1>, scalar_prefetch = 0 : i64, scratch_operands = 0 : i64, tpu.core_type = #tpu.core_type<tc>, window_params = [{transform_indices = @transform_0, window_bounds = array<i64: 32, 256>}, {transform_indices = @transform_1, window_bounds = array<i64: 32, 128>}, {transform_indices = @transform_2, window_bounds = array<i64: 1, 2, 8, 128>}]} {
    %c0_i32 = arith.constant 0 : i32
    %0 = arith.cmpi eq, %arg1, %c0_i32 : i32
    %1 = arith.extui %0 : i1 to i32
    %c0_i32_0 = arith.constant 0 : i32
    %2 = arith.cmpi ne, %1, %c0_i32_0 : i32
    scf.if %2 {
      %cst_25 = arith.constant 0.000000e+00 : f32
      %50 = vector.broadcast %cst_25 : f32 to vector<1x2x8x128xf32>
      %c0_26 = arith.constant 0 : index
      %c0_27 = arith.constant 0 : index
      %c0_28 = arith.constant 0 : index
      %c0_29 = arith.constant 0 : index
      %51 = vector.load %arg4[%c0_26, %c0_27, %c0_28, %c0_29] : memref<1x2x8x128xf32, #tpu.memory_space<vmem>>, vector<1x2x8x128xf32>
      tpu.vector_store %arg4[%c0_26, %c0_27, %c0_28, %c0_29], %50 {strides = array<i32>} : memref<1x2x8x128xf32, #tpu.memory_space<vmem>>, vector<1x2x8x128xf32>,
    } else {
    }
    %c0 = arith.constant 0 : index
    %c0_1 = arith.constant 0 : index
    %3 = vector.load %arg2[%c0, %c0_1] : memref<32x256xf32, #tpu.memory_space<vmem>>, vector<32x256xf32>
    %4 = vector.extract_strided_slice %3 {offsets = [0, 0], sizes = [32, 128], strides = [1, 1]} : vector<32x256xf32> to vector<32x128xf32>
    %5 = vector.extract_strided_slice %3 {offsets = [0, 128], sizes = [32, 128], strides = [1, 1]} : vector<32x256xf32> to vector<32x128xf32>
    %c0_2 = arith.constant 0 : index
    %c0_3 = arith.constant 0 : index
    %6 = vector.load %arg3[%c0_2, %c0_3] : memref<32x128xi8, #tpu.memory_space<vmem>>, vector<32x128xi8>
    %7 = arith.extsi %6 : vector<32x128xi8> to vector<32x128xi32>
    %c0_i32_4 = arith.constant 0 : i32
    %8 = vector.broadcast %c0_i32_4 : i32 to vector<32x128xi32>
    %9 = arith.cmpi sgt, %7, %8 : vector<32x128xi32>
    %c1_i32 = arith.constant 1 : i32
    %10 = vector.broadcast %c1_i32 : i32 to vector<32x128xi32>
    %11 = arith.cmpi sgt, %7, %10 : vector<32x128xi32>
    %12 = arith.extui %9 : vector<32x128xi1> to vector<32x128xi32>
    %13 = arith.sitofp %12 : vector<32x128xi32> to vector<32x128xf32>
    %14 = arith.subf %4, %5 : vector<32x128xf32>
    %15 = arith.subf %5, %4 : vector<32x128xf32>
    %16 = arith.select %11, %14, %15 : vector<32x128xi1>, vector<32x128xf32>
    %cst = arith.constant 0.000000e+00 : f32
    %17 = vector.broadcast %cst : f32 to vector<32x128xf32>
    %18 = arith.maximumf %16, %17 : vector<32x128xf32>
    %19 = math.absf %16 : vector<32x128xf32>
    %cst_5 = arith.constant 0.000000e+00 : f32
    %20 = vector.broadcast %cst_5 : f32 to vector<32x128xf32>
    %21 = arith.subf %20, %19 : vector<32x128xf32>
    %22 = math.exp %21 : vector<32x128xf32>
    %cst_6 = arith.constant 1.000000e+00 : f32
    %23 = vector.broadcast %cst_6 : f32 to vector<32x128xf32>
    %24 = arith.addf %23, %22 : vector<32x128xf32>
    %25 = math.log %24 : vector<32x128xf32>
    %26 = arith.addf %18, %25 : vector<32x128xf32>
    %27 = arith.cmpf ogt, %5, %4 : vector<32x128xf32>
    %28 = arith.xori %27, %11 : vector<32x128xi1>
    %cst_7 = arith.constant dense<true> : vector<32x128xi1>
    %29 = arith.xori %28, %cst_7 : vector<32x128xi1>
    %30 = arith.extui %29 : vector<32x128xi1> to vector<32x128xi32>
    %31 = arith.sitofp %30 : vector<32x128xi32> to vector<32x128xf32>
    %32 = arith.mulf %26, %13 : vector<32x128xf32>
    %33 = vector.shape_cast %32 : vector<32x128xf32> to vector<4x8x128xf32>
    %cst_8 = arith.constant dense<0.000000e+00> : vector<8x128xf32>
    %34 = vector.multi_reduction <add>, %33, %cst_8 [0] : vector<4x8x128xf32> to vector<8x128xf32>
    %35 = arith.mulf %31, %13 : vector<32x128xf32>
    %36 = vector.shape_cast %35 : vector<32x128xf32> to vector<4x8x128xf32>
    %cst_9 = arith.constant dense<0.000000e+00> : vector<8x128xf32>
    %37 = vector.multi_reduction <add>, %36, %cst_9 [0] : vector<4x8x128xf32> to vector<8x128xf32>
    %c0_10 = arith.constant 0 : index
    %c0_11 = arith.constant 0 : index
    %c0_12 = arith.constant 0 : index
    %c0_13 = arith.constant 0 : index
    %38 = vector.load %arg4[%c0_10, %c0_11, %c0_12, %c0_13] : memref<1x2x8x128xf32, #tpu.memory_space<vmem>>, vector<1x1x8x128xf32>
    %39 = vector.shape_cast %38 : vector<1x1x8x128xf32> to vector<8x128xf32>
    %40 = arith.addf %39, %34 : vector<8x128xf32>
    %c0_14 = arith.constant 0 : index
    %c0_15 = arith.constant 0 : index
    %c0_16 = arith.constant 0 : index
    %c0_17 = arith.constant 0 : index
    %41 = vector.load %arg4[%c0_14, %c0_15, %c0_16, %c0_17] : memref<1x2x8x128xf32, #tpu.memory_space<vmem>>, vector<1x1x8x128xf32>
    %42 = vector.shape_cast %41 : vector<1x1x8x128xf32> to vector<8x128xf32>
    %43 = vector.shape_cast %40 : vector<8x128xf32> to vector<1x1x8x128xf32>
    tpu.vector_store %arg4[%c0_14, %c0_15, %c0_16, %c0_17], %43 {strides = array<i32>} : memref<1x2x8x128xf32, #tpu.memory_space<vmem>>, vector<1x1x8x128xf32>,
    %c0_18 = arith.constant 0 : index
    %c1 = arith.constant 1 : index
    %c0_19 = arith.constant 0 : index
    %c0_20 = arith.constant 0 : index
    %44 = vector.load %arg4[%c0_18, %c1, %c0_19, %c0_20] : memref<1x2x8x128xf32, #tpu.memory_space<vmem>>, vector<1x1x8x128xf32>
    %45 = vector.shape_cast %44 : vector<1x1x8x128xf32> to vector<8x128xf32>
    %46 = arith.addf %45, %37 : vector<8x128xf32>
    %c0_21 = arith.constant 0 : index
    %c1_22 = arith.constant 1 : index
    %c0_23 = arith.constant 0 : index
    %c0_24 = arith.constant 0 : index
    %47 = vector.load %arg4[%c0_21, %c1_22, %c0_23, %c0_24] : memref<1x2x8x128xf32, #tpu.memory_space<vmem>>, vector<1x1x8x128xf32>
    %48 = vector.shape_cast %47 : vector<1x1x8x128xf32> to vector<8x128xf32>
    %49 = vector.shape_cast %46 : vector<8x128xf32> to vector<1x1x8x128xf32>
    tpu.vector_store %arg4[%c0_21, %c1_22, %c0_23, %c0_24], %49 {strides = array<i32>} : memref<1x2x8x128xf32, #tpu.memory_space<vmem>>, vector<1x1x8x128xf32>,
    return
  }
  func.func @transform_0(%arg0: i32, %arg1: i32) -> (i32, i32) {
    %c1_i32 = arith.constant 1 : i32
    %0 = arith.muli %arg0, %c1_i32 : i32
    %1 = arith.addi %0, %arg1 : i32
    %c0_i32 = arith.constant 0 : i32
    %c0_i32_0 = arith.constant 0 : i32
    return %1, %c0_i32 : i32, i32
  }
  func.func @transform_1(%arg0: i32, %arg1: i32) -> (i32, i32) {
    %c1_i32 = arith.constant 1 : i32
    %0 = arith.muli %arg0, %c1_i32 : i32
    %1 = arith.addi %0, %arg1 : i32
    %c0_i32 = arith.constant 0 : i32
    %c0_i32_0 = arith.constant 0 : i32
    return %1, %c0_i32 : i32, i32
  }
  func.func @transform_2(%arg0: i32, %arg1: i32) -> (i32, i32, i32, i32) {
    %c0_i32 = arith.constant 0 : i32
    %c0_i32_0 = arith.constant 0 : i32
    %c0_i32_1 = arith.constant 0 : i32
    %c0_i32_2 = arith.constant 0 : i32
    return %arg0, %c0_i32, %c0_i32_0, %c0_i32_1 : i32, i32, i32, i32
  }
}

</mosaic_0001>

<bundles_post_ra>
// kernel: tpu_custom_call.1
= control target key start
LH: loop header
LB: loop body
LE: loop exit
PB: predicated region body
PF: predicated region fallthrough
CT: control target
= control target key end

     0   :  { %7 = vsyncpa [#allocation3], 0  ;;  %s1067_s0 = inlined_call_operand.hbm [shape: f32[64,256], index: 0, kind: input, shape index: {}]   ;;  %s1068_s1 = inlined_call_operand.hbm [shape: s8[64,128], index: 1, kind: input, shape index: {}]   ;;  %s1069_s2 = inlined_call_operand.hbm [shape: f32[2,2,8,128], index: 2, kind: output, shape index: {}]  }
   0x1   :  { %9 = vsyncpa [#allocation3 + $0x1], 0 }
   0x2   :  { %10 = vsyncpa [#allocation6], 0 }
   0x3   :  { %12 = vsyncpa [#allocation6 + $0x1], 0 }
   0x4   :  { %13 = vsyncpa [#allocation4], 0 }
   0x5   :  { %15 = vsyncpa [#allocation4 + $0x1], 0  ;;  %s758_s9 = smov 0   ;;  %s760_s10 = smov 0  }
   0x6   :  { %s762_s11 = smov 0   ;;  %s764_s12 = smov 0  }
   0x7   :  { %s766_s13 = smov 0   ;;  %s768_s14 = smov 0  }
   0x8 LB: > { %s465_s15 = sadd.s32 4294967295, %s732_s14   ;;  %s466_s16 = sadd.s32 4294967294, %s732_s14   ;;  %s732_s14 = sphi %s768_s14, %s21_s14   ;;  %s728_s13 = sphi %s766_s13, %s1106_s13   ;;  %s724_s12 = sphi %s764_s12, %s1105_s12   ;;  %s720_s11 = sphi %s762_s11, %s1104_s11   ;;  %s716_s10 = sphi %s760_s10, %s1103_s10   ;;  %s712_s9 = sphi %s758_s9, %s1102_s9  }
   0x9   : > { %s33_s17 = sadd.s32 1, %s728_s13  ;;  %s42_s18 = sadd.s32 1, %s720_s11 }
   0xa   : > { %p35_p0 = scmp.ge.s32.totalorder %s33_s17, 2  ;;  %p49_p1 = scmp.ne.s32.totalorder %s720_s11, %s716_s10 }
   0xb   : > { %p50_p2 = scmp.eq.s32.totalorder %s732_s14, 0  ;;  %p55_p3 = scmp.ne.s32.totalorder %s716_s10, %s712_s9 }
   0xc   : > { %s1108_s17 = smov (%p35_p0, %s33_s17), 0  ;;  %p56_p5 = scmp.eq.s32.totalorder %s465_s15, 0 }
   0xd   : > { %p799_p4 = por %p50_p2, %p49_p1  ;;  %s39_s20 = ssub.s32 %s728_s13, %s1108_s17 }
   0xe   : > { %p107_p6 = scmp.eq.s32.totalorder %s465_s15, 1  ;;  %p40_p7 = scmp.eq.s32.totalorder %s39_s20, 0 }
   0xf   : > { %p805_p8 = por %p56_p5, %p55_p3  ;;  %p113_p10 = scmp.eq.s32.totalorder %s466_s16, 1 }
  0x10   : > { %p809_p9 = por %p107_p6, %p49_p1  ;;  %p514_p13 = scmp.lt.s32.totalorder %s732_s14, 2 }
  0x11   : > { %s1073_s21 = scalar_select %p805_p8, 1, 0 }
  0x12   : > { %s1074_s22 = scalar_select %p809_p9, 1, 0 }
  0x13   : > { %s814_s23 = scalar_select %p40_p7, %s720_s11, %s42_s18  }
  0x14   : > { %p816_p11 = por %p113_p10, %p55_p3  ;;  %s823_s25 = sand.u32 1, %s720_s11  }
  0x15   : > { %s469_s26 = sshll.u32 %s823_s25, 6  ;;  %s495_s27 = sshll.u32 %s728_s13, 10 }
  0x16   : > { %s1075_s24 = scalar_select %p816_p11, 1, 0 }
  0x17   : > { %s830_s30 = scalar_lea.hbm %s1067_s0, %s495_s27  ;;  %s137_s3 = scalar_lea.vmem [#allocation2], %s469_s26 }
  0x18   : > { %s146_s4 = sshll.u32 %s137_s3, 4  ;;  %p836_p0 = pnand %p514_p13, %p799_p4  ;;  %s832_s4 = int_to_ptr.vmem [resolvable:$true] %s146_s4 }
  0x19   : > { %s134_s6 = scalar_lea.sflag [#allocation3], %s823_s25  ;;  %s586_s7 = scalar_lea.hbm %s830_s30, 1024 }
  0x1a   : > { %p587_p2 = scmp.ne.s32.totalorder %s830_s30, %s586_s7  ;;  %p588_p3 = pneg %p836_p0 }
  0x1b   : > { %s591_s16 = scalar_lea.hbm %s1067_s0, 2048  ;;  %p592_p4 = scmp.lt.u32.totalorder %s830_s30, %s1067_s0 }
  0x1c   : > { %p589_p5 = pnand %p588_p3, %p587_p2  ;;  %p593_p7 = scmp.lt.u32.totalorder %s591_s16, %s586_s7 }
  0x1d   : > { %p595_p13 = scmp.lt.u32.totalorder %s586_s7, %s830_s30 }
  0x1e   : > { %p590_p6 = pneg %p589_p5  ;;  %p594_p10 = por %p593_p7, %p592_p4 }
  0x20   : > { %p596_p12 = por %p595_p13, %p594_p10 }
  0x22   : > { %p597_p1 = pnand %p596_p12, %p590_p6 }
  0x24   : > { %600 = shalt.err (!%p597_p1)
}
  0x25   : > { %s601_s20 = scalar_lea.vmem %s832_s4, 1024  ;;  %s734_s26 = smov [#allocation2]  }
  0x26   : > { %p602_p2 = scmp.ne.s32.totalorder %s832_s4, %s601_s20  ;;  %s606_s27 = sshll.u32 %s734_s26, 4  ;;  %s607_s27 = int_to_ptr.vmem [resolvable:$false] %s606_s27 }
  0x27   : > { %s608_s28 = scalar_lea.vmem %s607_s27, 2048  ;;  %p609_p9 = scmp.lt.s32.totalorder %s832_s4, %s607_s27 }
  0x28   : > { %p604_p5 = pnand %p602_p2, %p588_p3  ;;  %p610_p4 = scmp.lt.s32.totalorder %s608_s28, %s601_s20 }
  0x2a   : > { %p605_p11 = pneg %p604_p5  ;;  %p611_p7 = por %p610_p4, %p609_p9 }
  0x2c   : > { %p612_p10 = pnand %p611_p7, %p605_p11 }
  0x2e   : > { %615 = shalt.err (!%p612_p10)
}
  0x2f   : > { %s735_s29 = smov 256   ;;  %s736_s3 = smov 16  }
  0x30   : > { %506 = dma.hbm_to_vmem [thread:$0]  (!%p836_p0), %s830_s30, 1024, %s832_s4, %s134_s6, %s735_s29, %s735_s29, %s736_s3  }
  0x31   : > { %p173_p12 = scmp.lt.s32.totalorder %s732_s14, 3  ;;  %s473_s7 = sshll.u32 %s823_s25, 3 }
  0x32   : > { %s474_s8 = sshll.u32 %s728_s13, 7  ;;  %p1077_p9 = scmp.ge.s32.totalorder %s732_s14, 1 }
  0x33   : > { %s881_s19 = scalar_lea.hbm %s1068_s1, %s474_s8  ;;  %s160_s20 = scalar_lea.vmem [#allocation5], %s473_s7 }
  0x34   : > { %p874_p11 = pnand %p1077_p9, %p173_p12  ;;  %s168_s26 = sshll.u32 %s160_s20, 4  ;;  %s169_s26 = int_to_ptr.vmem [resolvable:$true] %s168_s26 }
  0x35   : > { %s157_s30 = scalar_lea.sflag [#allocation6], %s823_s25  ;;  %s616_s4 = scalar_lea.hbm %s881_s19, 128 }
  0x36   : > { %s1078_s15 = scalar_select %p874_p11, 1, 0 }
  0x37   : > { %p617_p1 = scmp.ne.s32.totalorder %s881_s19, %s616_s4  ;;  %s621_s28 = scalar_lea.hbm %s1068_s1, 256 }
  0x38   : > { %p622_p2 = scmp.lt.u32.totalorder %s881_s19, %s1068_s1  ;;  %p623_p5 = scmp.lt.u32.totalorder %s621_s28, %s616_s4 }
  0x39   : > { %p619_p6 = pnand %p617_p1, %p588_p3  ;;  %p625_p7 = scmp.lt.u32.totalorder %s616_s4, %s881_s19 }
  0x3a   : > { %p624_p4 = por %p623_p5, %p622_p2 }
  0x3b   : > { %p620_p13 = pneg %p619_p6 }
  0x3c   : > { %p626_p10 = por %p625_p7, %p624_p4 }
  0x3e   : > { %p627_p12 = pnand %p626_p10, %p620_p13 }
  0x40   : > { %630 = shalt.err (!%p627_p12)
}
  0x41   : > { %s631_s25 = scalar_lea.vmem %s169_s26, 128  ;;  %s737_s7 = smov [#allocation5]  }
  0x42   : > { %p632_p9 = scmp.ne.s32.totalorder %s169_s26, %s631_s25  ;;  %s636_s8 = sshll.u32 %s737_s7, 4  ;;  %s637_s8 = int_to_ptr.vmem [resolvable:$false] %s636_s8 }
  0x43   : > { %s638_s16 = scalar_lea.vmem %s637_s8, 256  ;;  %p639_p8 = scmp.lt.s32.totalorder %s169_s26, %s637_s8 }
  0x44   : > { %p634_p1 = pnand %p632_p9, %p588_p3  ;;  %p640_p11 = scmp.lt.s32.totalorder %s638_s16, %s631_s25 }
  0x46   : > { %p635_p6 = pneg %p634_p1  ;;  %p641_p2 = por %p640_p11, %p639_p8 }
  0x48   : > { %p642_p5 = pnand %p641_p2, %p635_p6 }
  0x4a   : > { %645 = shalt.err (!%p642_p5)
}
  0x4b   : > { %509 = dma.hbm_to_vmem [thread:$0]  (!%p836_p0), %s881_s19, 128, %s169_s26, %s157_s30  }
  0x4c   : > { %p1079_p13 = scmp.ne.s32.totalorder %s1078_s15, 0 }
  0x4d   : > { %s906_s18 = sand.u32 (!%p1079_p13), 1, %s716_s10   ;;  %p1080_p3 = scmp.ne.s32.totalorder (!%p1079_p13), %s1073_s21, 0 }
  0x4e   : > { %177 = sbr.rel (%p1079_p13) target bundleno = 156 (0x9c), region = 28  ;;  %s476_s20 = sshll.u32 (!%p1079_p13), %s906_s18, 6 }
  0x4f   : > { %s180_s4 = scalar_lea.sflag (!%p1079_p13), [#allocation3], %s906_s18  ;;  %s183_s6 = scalar_lea.vmem (!%p1079_p13), [#allocation2], %s476_s20 }
  0x55   : > { %699 = dma.done.wait (%p1080_p3), %s180_s4, 1024  }
  0x56   : > { %701 = vsyncadd (%p1080_p3), %s180_s4, 4294966272  ;;  %s477_s5 = sshll.u32 %s906_s18, 3  ;;  %s189_s15 = scalar_lea.sflag [#allocation6], %s906_s18 }
  0x57   : > { %s192_s19 = scalar_lea.vmem [#allocation5], %s477_s5 }
  0x58   : > { %703 = dma.done.wait (%p1080_p3), %s189_s15, 128  }
  0x59   : > { %705 = vsyncadd (%p1080_p3), %s189_s15, 4294967168  ;;  %v227_v0 = vld [vmem:[%s183_s6] sm:$0xff]  ;;  %v228_v1 = vld [vmem:[%s183_s6 + $0x8] sm:$0xff]  ;;  %v738_v32 = vmov 0.0   ;;  %vm739_vm15 = vmmov 1   ;;  %s478_s21 = sshll.u32 %s906_s18, 4 }
  0x5a   : > { %v229_v2 = vld [vmem:[%s183_s6 + $0x10] sm:$0xff]  ;;  %v230_v3 = vld [vmem:[%s183_s6 + $0x18] sm:$0xff]  ;;  %v231_v4 = vld [vmem:[%s183_s6 + $0x20] sm:$0xff]  ;;  %v256_v6 = vsub.f32 %v227_v0, %v228_v1  ;;  %v260_v12 = vsub.f32 %v228_v1, %v227_v0  ;;  %vm304_vm0 = vcmp.gt.f32.partialorder %v228_v1, %v227_v0  ;;  %s1001_s26 = scalar_lea.vmem [#allocation7], %s478_s21  ;;  %s496_s30 = sshll.u32 %s724_s12, 8 }
  0x5b   : > { %v232_v5 = vld [vmem:[%s183_s6 + $0x28] sm:$0xff]  ;;  %v233_v7 = vld [vmem:[%s183_s6 + $0x30] sm:$0xff]  ;;  %v234_v8 = vld [vmem:[%s183_s6 + $0x38] sm:$0xff]  ;;  %v257_v10 = vsub.f32 %v229_v2, %v230_v3  ;;  %v261_v18 = vsub.f32 %v230_v3, %v229_v2  ;;  %vm305_vm2 = vcmp.gt.f32.partialorder %v230_v3, %v229_v2  ;;  %s359_s27 = sshll.u32 %s1001_s26, 4  ;;  %s1015_s3 = scalar_lea.hbm %s1069_s2, %s496_s30  ;;  %s1017_s27 = int_to_ptr.vmem [resolvable:$true] %s359_s27 }
  0x5c   : > { %v235_v9 = vld [vmem:[%s192_s19] sm:$0xff]  ;;  %v258_v11 = vsub.f32 %v231_v4, %v232_v5  ;;  %v259_v17 = vsub.f32 %v233_v7, %v234_v8  ;;  %v262_v19 = vsub.f32 %v232_v5, %v231_v4  ;;  %v263_v20 = vsub.f32 %v234_v8, %v233_v7  ;;  %s346_s25 = scalar_lea.sflag [#allocation4], %s906_s18  ;;  %s646_s7 = scalar_lea.vmem %s1017_s27, 256 }
  0x5d   : > { %v236_v13 = vunpack.c.0.s8 %v235_v9  ;;  %v237_v14 = vunpack.c.1.s8 %v235_v9  ;;  %v238_v15 = vunpack.c.2.s8 %v235_v9  ;;  %v239_v16 = vunpack.c.3.s8 %v235_v9  ;;  %p647_p8 = scmp.ne.s32.totalorder %s1017_s27, %s646_s7  ;;  %p1099_p0 = scmp.ne.s32.totalorder %s1074_s22, 0 }
  0x5e   : > { %vm306_vm3 = vcmp.gt.f32.partialorder %v232_v5, %v231_v4  ;;  %vm307_vm14 = vcmp.gt.f32.partialorder %v234_v8, %v233_v7  ;;  %s740_s12 = smov [#allocation7]  }
  0x5f   : > { %vm920_vm1 = vcmp.gt.s32.totalorder %v236_v13, 0  ;;  %vm244_vm4 = vcmp.gt.s32.totalorder %v236_v13, 1  ;;  %vm245_vm5 = vcmp.gt.s32.totalorder %v237_v14, 1  ;;  %vm246_vm6 = vcmp.gt.s32.totalorder %v238_v15, 1  ;;  %p648_p11 = pnand %p647_p8, %p1099_p0  ;;  %s650_s8 = sshll.u32 %s740_s12, 4  ;;  %s651_s8 = int_to_ptr.vmem [resolvable:$false] %s650_s8 }
  0x60   : > { %vm924_vm7 = vcmp.gt.s32.totalorder %v239_v16, 1  ;;  %vm928_vm8 = vcmp.gt.s32.totalorder %v237_v14, 0  ;;  %vm933_vm9 = vmxor %vm304_vm0, %vm244_vm4  ;;  %v937_v25 = vsel %vm244_vm4, %v256_v6, %v260_v12  ;;  %v939_v26 = vsel %vm245_vm5, %v257_v10, %v261_v18  ;;  %s652_s16 = scalar_lea.vmem %s651_s8, 512  ;;  %p653_p7 = scmp.lt.s32.totalorder %s1017_s27, %s651_s8 }
  0x61   : > { %v941_v27 = vsel %vm246_vm6, %v258_v11, %v262_v19  ;;  %v945_v28 = vsel %vm924_vm7, %v259_v17, %v263_v20  ;;  %vm947_vm10 = vmxor %vm305_vm2, %vm245_vm5  ;;  %vm951_vm11 = vcmp.gt.s32.totalorder %v238_v15, 0  ;;  %vm955_vm12 = vcmp.gt.s32.totalorder %v239_v16, 0  ;;  %p649_p4 = pneg %p648_p11  ;;  %p654_p10 = scmp.lt.s32.totalorder %s652_s16, %s646_s7 }
  0x62   : > { %v961_v33 = vsel %vm920_vm1, 1.0, %v738_v32  ;;  %vm964_vm13 = vmxor %vm306_vm3, %vm246_vm6  ;;  %v272_v35 = vand.u32 2147483647, %v937_v25  ;;  %v273_v36 = vand.u32 2147483647, %v939_v26  ;;  %v976_v38 = vsel %vm928_vm8, 1.0, %v738_v32 }
  0x63   : > { %v274_v37 = vand.u32 2147483647, %v941_v27  ;;  %vm312_vm0 = vmxor %vm933_vm9, %vm739_vm15  ;;  %v275_v39 = vand.u32 2147483647, %v945_v28  ;;  %v481_v46 = vsel %vm951_vm11, 1.0, %v738_v32  ;;  %v482_v47 = vsel %vm955_vm12, 1.0, %v738_v32  ;;  %p655_p12 = por %p654_p10, %p653_p7 }
  0x64   : > { %vm981_vm1 = vmxor %vm307_vm14, %vm924_vm7  ;;  %v483_v41 = vsel %vm312_vm0, 1.0, %v738_v32  ;;  %v276_v42 = vsub.f32 0.0, %v272_v35  ;;  %v277_v43 = vsub.f32 0.0, %v273_v36  ;;  %v268_v6 = vmax.f32 %v937_v25, 0.0 }
  0x65   : > { %v278_v44 = vsub.f32 0.0, %v274_v37  ;;  %vm313_vm2 = vmxor %vm947_vm10, %vm739_vm15  ;;  %v331_v45 = vmul.f32 %v483_v41, %v961_v33  ;;  %v279_v48 = vsub.f32 0.0, %v275_v39  ;;  %v269_v8 = vmax.f32 %v939_v26, 0.0  ;;  %p656_p9 = pnand %p655_p12, %p649_p4 }
  0x66   : > { %vm314_vm3 = vmxor %vm964_vm13, %vm739_vm15  ;;  %v484_v49 = vsel %vm313_vm2, 1.0, %v738_v32  ;;  %v280_v50 = vmul.f32 1.442695, %v276_v42  ;;  %v282_v51 = vmul.f32 1.442695, %v277_v43  ;;  %v270_v10 = vmax.f32 %v941_v27, 0.0 }
  0x67   : > { %v284_v52 = vmul.f32 1.442695, %v278_v44  ;;  %vm315_vm4 = vmxor %vm981_vm1, %vm739_vm15  ;;  %v332_v53 = vmul.f32 %v484_v49, %v976_v38  ;;  %v286_v54 = vmul.f32 1.442695, %v279_v48  ;;  %v485_v55 = vsel %vm314_vm3, 1.0, %v738_v32 }
  0x68   : > { %v486_v56 = vsel %vm315_vm4, 1.0, %v738_v32  ;;  %570 = vpow2.f32 %v280_v50  ;;  %v333_v57 = vmul.f32 %v485_v55, %v481_v46  ;;  %v271_v13 = vmax.f32 %v945_v28, 0.0 }
  0x69   : > { %v334_v58 = vmul.f32 %v486_v56, %v482_v47  ;;  %v335_v59 = vadd.f32 %v332_v53, %v331_v45  ;;  %572 = vpow2.f32 %v282_v51 }
  0x6a   : > { %574 = vpow2.f32 %v284_v52 }
  0x6b   : > { %v336_v60 = vadd.f32 %v335_v59, %v333_v57  ;;  %576 = vpow2.f32 %v286_v54 }
  0x6d   : > { %v337_v61 = vadd.f32 %v336_v60, %v334_v58 }
  0x6f   : > { %488 = vst [vmem:[%s1001_s26 + $0x8] sm:$0xff] %v337_v61 }
  0x72   : > { %v571_v62 = vpop.eup %570 }
  0x73   : > { %v573_v63 = vpop.eup %572  ;;  %v288_v0 = vadd.f32 1.0, %v571_v62 }
  0x74   : > { %v575_v1 = vpop.eup %574  ;;  %v289_v2 = vadd.f32 1.0, %v573_v63 }
  0x75   : > { %v577_v3 = vpop.eup %576  ;;  %v290_v4 = vadd.f32 1.0, %v575_v1  ;;  %578 = vlog2.f32 %v288_v0 }
  0x76   : > { %v291_v5 = vadd.f32 1.0, %v577_v3  ;;  %580 = vlog2.f32 %v289_v2 }
  0x77   : > { %582 = vlog2.f32 %v290_v4 }
  0x78   : > { %584 = vlog2.f32 %v291_v5 }
  0x7f   : > { %v579_v7 = vpop.eup %578 }
  0x80   : > { %v581_v9 = vpop.eup %580  ;;  %v293_v11 = vmul.f32 0.6931472, %v579_v7 }
  0x81   : > { %v583_v12 = vpop.eup %582  ;;  %v295_v14 = vmul.f32 0.6931472, %v581_v9 }
  0x82   : > { %v585_v15 = vpop.eup %584  ;;  %v297_v16 = vmul.f32 0.6931472, %v583_v12  ;;  %v300_v17 = vadd.f32 %v293_v11, %v268_v6 }
  0x83   : > { %v299_v18 = vmul.f32 0.6931472, %v585_v15  ;;  %v301_v19 = vadd.f32 %v295_v14, %v269_v8 }
  0x84   : > { %v302_v20 = vadd.f32 %v297_v16, %v270_v10  ;;  %v324_v21 = vmul.f32 %v961_v33, %v300_v17 }
  0x85   : > { %v303_v22 = vadd.f32 %v299_v18, %v271_v13  ;;  %v325_v23 = vmul.f32 %v976_v38, %v301_v19 }
  0x86   : > { %v326_v24 = vmul.f32 %v481_v46, %v302_v20 }
  0x87   : > { %v327_v25 = vmul.f32 %v482_v47, %v303_v22  ;;  %v328_v26 = vadd.f32 %v325_v23, %v324_v21 }
  0x89   : > { %v329_v27 = vadd.f32 %v328_v26, %v326_v24 }
  0x8b   : > { %v330_v28 = vadd.f32 %v329_v27, %v327_v25 }
  0x8d   : > { %340 = vst [vmem:[%s1001_s26] sm:$0xff] %v330_v28 }
  0x8e   : > { %659 = shalt.err (!%p656_p9)
}
  0x8f   : > { %s660_s20 = scalar_lea.hbm %s1015_s3, 256  ;;  %s664_s5 = scalar_lea.hbm %s1069_s2, 512 }
  0x90   : > { %p661_p1 = scmp.ne.s32.totalorder %s1015_s3, %s660_s20  ;;  %p665_p5 = scmp.lt.u32.totalorder %s1015_s3, %s1069_s2 }
  0x91   : > { %p666_p13 = scmp.lt.u32.totalorder %s664_s5, %s660_s20  ;;  %p668_p8 = scmp.lt.u32.totalorder %s660_s20, %s1015_s3 }
  0x92   : > { %p662_p6 = pnand %p661_p1, %p1099_p0 }
  0x93   : > { %p667_p3 = por %p666_p13, %p665_p5 }
  0x94   : > { %p663_p2 = pneg %p662_p6 }
  0x95   : > { %p669_p11 = por %p668_p8, %p667_p3 }
  0x97   : > { %p670_p4 = pnand %p669_p11, %p663_p2 }
  0x99   : > { %673 = shalt.err (!%p670_p4)
}
  0x9a   : > { %s741_s21 = smov 128   ;;  %s742_s26 = smov 8  }
  0x9b   : > { %501 = dma.vmem_to_hbm [thread:$0]  (%p1099_p0), %s1017_s27, 256, %s1015_s3, %s346_s25, %s741_s21, %s741_s21, %s742_s26  }
  0x9c PF: > { %s374_s30 = sand.u32 1, %s712_s9   ;;  %p1100_p7 = scmp.ne.s32.totalorder %s1075_s24, 0 }
  0x9d   : > { %p1101_p10 = scmp.ge.s32.totalorder %s732_s14, 2  ;;  %s375_s28 = scalar_lea.sflag [#allocation4], %s374_s30 }
  0x9f   : > { %p511_p12 = pnand %p1101_p10, %p1100_p7 }
  0xa1   : > { %707 = dma.done.wait (!%p511_p12), %s375_s28, 256  }
  0xa2   : > { %709 = vsyncadd (!%p511_p12), %s375_s28, 4294967040  ;;  %s21_s14 = sadd.s32 1, %s732_s14   ;;  %s1102_s9 = smov %s716_s10 }
  0xa3   : > { %p18_p9 = scmp.ge.s32.totalorder %s21_s14, 4   ;;  %s1103_s10 = smov %s720_s11 }
  0xa4   : > { %s1104_s11 = smov %s814_s23  ;;  %s1105_s12 = smov %s728_s13 }
  0xa5   : > { %s1106_s13 = smov %s1108_s17  ;;  %20 = sbr.rel (!%p18_p9) target bundleno = 8 (0x8), region = 91 }
  0xac   :  { %380 = vsyncpa [#allocation3], 1 }
  0xad   :  { %382 = vsyncpa [#allocation3 + $0x1], 1 }
  0xae   :  { %383 = vsyncpa [#allocation6], 1 }
  0xaf   :  { %385 = vsyncpa [#allocation6 + $0x1], 1 }
  0xb0   :  { %386 = vsyncpa [#allocation4], 1 }
  0xb1   :  { %388 = vsyncpa [#allocation4 + $0x1], 1 }

</bundles_post_ra>
